<compile_context>
chip_gen: v6e
topology: v6e:2x2x1
jax: 0.10.0
libtpu: 0.0.40
codegen_flags: <defaults>
</compile_context>

<pallas_src>
import jax
import jax.numpy as jnp
from jax.experimental import pallas as pl
from jax.experimental.pallas import tpu as pltpu


def _round_up(n, m):
    return ((n + m - 1) // m) * m


# --------------------------------------------------------------------------- #
# One-time (per-checkpoint) parameter preprocessing — keep OFF the hot path.
# --------------------------------------------------------------------------- #
def prepare_params(params, compute_dtype=jnp.bfloat16):
    """Fold CategoricalNet's two bias-only linears into one matmul and concat it
    with the critic fc weight so the kernel does a single MXU pass:
        y = x @ [Wf | W1@W2] + [bf | b1@W2 + b2]
    Column order [critic(256) | action(A)] keeps both slices 128-lane aligned.
    """
    w_act = jnp.dot(params["w1"], params["w2"])                    # (F, A)
    b_act = jnp.dot(params["b1"], params["w2"]) + params["b2"]     # (A,)
    w_cat = jnp.concatenate([params["wf"], w_act], axis=1).astype(compute_dtype)
    b_cat = jnp.concatenate([params["bf"], b_act], axis=0)[None, :].astype(jnp.float32)
    wv = params["wv"].reshape(1, -1).astype(jnp.float32)           # (1, 256)
    bv = params["bv"].reshape(1, 1).astype(jnp.float32)            # (1, 1)
    return dict(w_cat=w_cat, b_cat=b_cat, wv=wv, bv=bv)


# --------------------------------------------------------------------------- #
# Kernel
# --------------------------------------------------------------------------- #
def policy_heads_kernel(x_ref, wcat_ref, bcat_ref, wv_ref, bv_ref,
                        logits_ref, value_ref):
    # x_ref:      (TB, F)        trunk features (stored dtype; cast on the tile)
    # wcat_ref:   (F, 256+A)     [critic fc | folded action] weight, compute dtype
    # bcat_ref:   (1, 256+A)     matching bias, f32
    # wv_ref:     (1, 256)       critic fc2 weight row, f32
    # bv_ref:     (1, 1)         critic fc2 bias, f32
    # logits_ref: (TB, A) f32,   value_ref: (TB, 1) f32
    h_c = wv_ref.shape[1]                      # 256
    x = x_ref[...].astype(wcat_ref.dtype)      # in-kernel cast (free under MXU)

    # One MXU pass for both heads; f32 accumulation + f32 bias epilogue on the VPU.
    y = jnp.dot(x, wcat_ref[...], preferred_element_type=jnp.float32) + bcat_ref[...]

    # Action head: columns [h_c:] (slice starts at lane 256, 128-aligned).
    logits_ref[...] = y[:, h_c:].astype(logits_ref.dtype)

    # Critic head: ReLU, then 256-wide f32 multiply + lane reduction (h kept in f32).
    h = jnp.maximum(y[:, :h_c], 0.0)
    v = jnp.sum(h * wv_ref[...], axis=-1, keepdims=True) + bv_ref[...]
    value_ref[...] = v.astype(value_ref.dtype)


# --------------------------------------------------------------------------- #
# Wrapper (hot path: a single pallas_call, nothing else)
# --------------------------------------------------------------------------- #
def _batch_tile(B, block_b):
    if B < 8:
        return B  # full-dim block is legal without sublane padding
    # Aim for >= 4 batch tiles (so the "parallel" axis shards across v7x's 2 TCs),
    # capped at block_b rows; keep the tile a multiple of 8 sublanes.
    return min(block_b, max(8, _round_up(pl.cdiv(B, 4), 8)))


def policy_heads_forward(x, prepped, *, block_b=1024):
    """Fused CategoricalNet + CriticHead forward.

    x: (B, F) trunk features.
    prepped: output of prepare_params().
    returns (logits (B, A) f32, value (B, 1) f32)
    """
    B, F = x.shape
    h_c = prepped["wv"].shape[1]                 # 256
    A = prepped["w_cat"].shape[1] - h_c          # dim_actions

    TB = _batch_tile(B, block_b)
    grid = (pl.cdiv(B, TB),)

    def tile_spec(n):
        return pl.BlockSpec((TB, n), lambda i: (i, 0))

    def resident_spec(shape):
        # Constant block index -> stays VMEM-resident across batch tiles.
        return pl.BlockSpec(shape, lambda i: (0, 0))

    logits, value = pl.pallas_call(
        policy_heads_kernel,
        out_shape=(
            jax.ShapeDtypeStruct((B, A), jnp.float32),
            jax.ShapeDtypeStruct((B, 1), jnp.float32),
        ),
        grid=grid,
        in_specs=[
            tile_spec(F),
            resident_spec((F, h_c + A)),
            resident_spec((1, h_c + A)),
            resident_spec((1, h_c)),
            resident_spec((1, 1)),
        ],
        out_specs=(
            tile_spec(A),
            tile_spec(1),
        ),
        compiler_params=pltpu.CompilerParams(
            dimension_semantics=("parallel",),
        ),
    )(x, prepped["w_cat"], prepped["b_cat"], prepped["wv"], prepped["bv"])

    return logits, value


# --------------------------------------------------------------------------- #
# Reference + init (mirrors the PyTorch module)
# --------------------------------------------------------------------------- #
def policy_heads_reference(x, p):
    """Plain-JAX reference: same math as the PyTorch forward (two-stage, unfolded)."""
    logits = (x @ p["w1"] + p["b1"]) @ p["w2"] + p["b2"]
    value = jnp.maximum(x @ p["wf"] + p["bf"], 0.0) @ p["wv"] + p["bv"]
    return logits, value


def init_params(key, num_inputs, num_outputs):
    """Deterministic init mirroring CategoricalNet / CriticHead __init__."""
    ks = jax.random.split(key, 6)
    hidden_a, hidden_c = 128, 256

    # CategoricalNet.linear: orthogonal(gain=0.01), zero bias.
    w1_pt = jax.nn.initializers.orthogonal(scale=0.01)(
        ks[0], (hidden_a, num_inputs), jnp.float32)            # PyTorch (out, in)
    b1 = jnp.zeros((hidden_a,), jnp.float32)
    # CategoricalNet.linear2: PyTorch default uniform(+-1/sqrt(fan_in)).
    ba = 1.0 / jnp.sqrt(jnp.float32(hidden_a))
    w2_pt = jax.random.uniform(ks[1], (num_outputs, hidden_a), jnp.float32, -ba, ba)
    b2 = jax.random.uniform(ks[2], (num_outputs,), jnp.float32, -ba, ba)

    # CriticHead.fc: orthogonal(gain=1), zero bias.
    wf_pt = jax.nn.initializers.orthogonal()(
        ks[3], (hidden_c, num_inputs), jnp.float32)
    bf = jnp.zeros((hidden_c,), jnp.float32)
    # CriticHead.fc2: PyTorch default uniform(+-1/sqrt(256)).
    bc = 1.0 / jnp.sqrt(jnp.float32(hidden_c))
    wv_pt = jax.random.uniform(ks[4], (1, hidden_c), jnp.float32, -bc, bc)
    bv = jax.random.uniform(ks[5], (1,), jnp.float32, -bc, bc)

    # Transpose to (in, out) layout for row-major MXU matmuls.
    return dict(w1=w1_pt.T, b1=b1, w2=w2_pt.T, b2=b2,
                wf=wf_pt.T, bf=bf, wv=wv_pt.T, bv=bv)


if __name__ == "__main__":
    key = jax.random.PRNGKey(0)
    kx, kp = jax.random.split(key)

    B = 8              # batch of environments (kept small for the demo)
    num_inputs = 32    # Policy.net.output_size (trunk feature dim)
    num_outputs = 8    # dim_actions

    x = jax.random.normal(kx, (B, num_inputs), jnp.float32)
    params = init_params(kp, num_inputs, num_outputs)
    ref_logits, ref_value = policy_heads_reference(x, params)

    # bf16 matmul operands (default perf config: native MXU input on v5e/v6e/v7x;
    # f32 accumulation + f32 bias/ReLU epilogue inside the kernel).
    prepped_bf16 = prepare_params(params, compute_dtype=jnp.bfloat16)
    logits_bf, value_bf = policy_heads_forward(x, prepped_bf16)
    jax.block_until_ready((logits_bf, value_bf))
    assert logits_bf.shape == (B, num_outputs) and value_bf.shape == (B, 1)
    assert jnp.allclose(logits_bf, ref_logits, atol=5e-2, rtol=5e-2)
    assert jnp.allclose(value_bf, ref_value, atol=5e-2, rtol=5e-2)

    # f32 path (tight check; folding W1@W2 changes float rounding slightly vs the
    # two-stage reference).
    prepped_f32 = prepare_params(params, compute_dtype=jnp.float32)
    logits_f32, value_f32 = policy_heads_forward(x, prepped_f32)
    jax.block_until_ready((logits_f32, value_f32))
    assert jnp.allclose(logits_f32, ref_logits, atol=5e-3, rtol=5e-3)
    assert jnp.allclose(value_f32, ref_value, atol=5e-3, rtol=5e-3)

    # TODO(synk): Policy.net trunk is abstract (not provided), and
    # CustomFixedCategorical's sample/mode/log_probs/entropy are distribution
    # utilities outside the dense forward hot path; this kernel returns the
    # action logits and critic value that feed them.
    print("KERNEL_OK")
</pallas_src>

<mosaic_0001>
module attributes {stable_mosaic.version = 11 : i64} {
  func.func @policy_heads_kernel(%arg0: i32, %arg1: memref<8x32xf32, #tpu.memory_space<vmem>>, %arg2: memref<32x264xbf16, #tpu.memory_space<vmem>>, %arg3: memref<1x264xf32, #tpu.memory_space<vmem>>, %arg4: memref<1x256xf32, #tpu.memory_space<vmem>>, %arg5: memref<1x1xf32, #tpu.memory_space<vmem>>, %arg6: memref<8x8xf32, #tpu.memory_space<vmem>>, %arg7: memref<8x1xf32, #tpu.memory_space<vmem>>) attributes {dimension_semantics = [#tpu.dimension_semantics<parallel>], iteration_bounds = array<i64: 1>, scalar_prefetch = 0 : i64, scratch_operands = 0 : i64, tpu.core_type = #tpu.core_type<tc>, window_params = [{transform_indices = @transform_0, window_bounds = array<i64: 8, 32>}, {pipeline_mode = #tpu.pipeline_mode<synchronous>, transform_indices = @transform_1, window_bounds = array<i64: 32, 264>}, {pipeline_mode = #tpu.pipeline_mode<synchronous>, transform_indices = @transform_2, window_bounds = array<i64: 1, 264>}, {pipeline_mode = #tpu.pipeline_mode<synchronous>, transform_indices = @transform_3, window_bounds = array<i64: 1, 256>}, {pipeline_mode = #tpu.pipeline_mode<synchronous>, transform_indices = @transform_4, window_bounds = array<i64: 1, 1>}, {transform_indices = @transform_5, window_bounds = array<i64: 8, 8>}, {transform_indices = @transform_6, window_bounds = array<i64: 8, 1>}]} {
    %c0 = arith.constant 0 : index
    %c0_0 = arith.constant 0 : index
    %0 = vector.load %arg1[%c0, %c0_0] : memref<8x32xf32, #tpu.memory_space<vmem>>, vector<8x32xf32>
    %1 = arith.truncf %0 : vector<8x32xf32> to vector<8x32xbf16>
    %c0_1 = arith.constant 0 : index
    %c0_2 = arith.constant 0 : index
    %2 = vector.load %arg2[%c0_1, %c0_2] : memref<32x264xbf16, #tpu.memory_space<vmem>>, vector<32x264xbf16>
    %cst = arith.constant dense<0.000000e+00> : vector<8x264xf32>
    %3 = tpu.matmul %1, %2, %cst {dimension_numbers = #tpu.dot_dimension_numbers<[1], [0], [0], [1], [0, 0, 1, 1], [], []>} : vector<8x32xbf16>, vector<32x264xbf16>, vector<8x264xf32> -> vector<8x264xf32>
    %c0_3 = arith.constant 0 : index
    %c0_4 = arith.constant 0 : index
    %4 = vector.load %arg3[%c0_3, %c0_4] : memref<1x264xf32, #tpu.memory_space<vmem>>, vector<1x264xf32>
    %5 = vector.broadcast %4 : vector<1x264xf32> to vector<8x264xf32>
    %6 = arith.addf %3, %5 : vector<8x264xf32>
    %7 = vector.extract_strided_slice %6 {offsets = [0, 256], sizes = [8, 8], strides = [1, 1]} : vector<8x264xf32> to vector<8x8xf32>
    %c0_5 = arith.constant 0 : index
    %c0_6 = arith.constant 0 : index
    %8 = vector.load %arg6[%c0_5, %c0_6] : memref<8x8xf32, #tpu.memory_space<vmem>>, vector<8x8xf32>
    tpu.vector_store %arg6[%c0_5, %c0_6], %7 {strides = array<i32>} : memref<8x8xf32, #tpu.memory_space<vmem>>, vector<8x8xf32>,
    %9 = vector.extract_strided_slice %6 {offsets = [0, 0], sizes = [8, 256], strides = [1, 1]} : vector<8x264xf32> to vector<8x256xf32>
    %cst_7 = arith.constant 0.000000e+00 : f32
    %10 = vector.broadcast %cst_7 : f32 to vector<8x256xf32>
    %11 = arith.maximumf %9, %10 : vector<8x256xf32>
    %c0_8 = arith.constant 0 : index
    %c0_9 = arith.constant 0 : index
    %12 = vector.load %arg4[%c0_8, %c0_9] : memref<1x256xf32, #tpu.memory_space<vmem>>, vector<1x256xf32>
    %13 = vector.broadcast %12 : vector<1x256xf32> to vector<8x256xf32>
    %14 = arith.mulf %11, %13 : vector<8x256xf32>
    %cst_10 = arith.constant dense<0.000000e+00> : vector<8xf32>
    %15 = vector.multi_reduction <add>, %14, %cst_10 [1] : vector<8x256xf32> to vector<8xf32>
    %16 = vector.shape_cast %15 : vector<8xf32> to vector<8x1xf32>
    %c0_11 = arith.constant 0 : index
    %c0_12 = arith.constant 0 : index
    %17 = vector.load %arg5[%c0_11, %c0_12] : memref<1x1xf32, #tpu.memory_space<vmem>>, vector<1x1xf32>
    %18 = vector.broadcast %17 : vector<1x1xf32> to vector<8x1xf32>
    %19 = arith.addf %16, %18 : vector<8x1xf32>
    %c0_13 = arith.constant 0 : index
    %c0_14 = arith.constant 0 : index
    %20 = vector.load %arg7[%c0_13, %c0_14] : memref<8x1xf32, #tpu.memory_space<vmem>>, vector<8x1xf32>
    tpu.vector_store %arg7[%c0_13, %c0_14], %19 {strides = array<i32>} : memref<8x1xf32, #tpu.memory_space<vmem>>, vector<8x1xf32>,
    return
  }
  func.func @transform_0(%arg0: i32) -> (i32, i32) {
    %c0_i32 = arith.constant 0 : i32
    %c0_i32_0 = arith.constant 0 : i32
    return %arg0, %c0_i32 : i32, i32
  }
  func.func @transform_1(%arg0: i32) -> (i32, i32) {
    %c0_i32 = arith.constant 0 : i32
    %c0_i32_0 = arith.constant 0 : i32
    %c0_i32_1 = arith.constant 0 : i32
    return %c0_i32, %c0_i32_0 : i32, i32
  }
  func.func @transform_2(%arg0: i32) -> (i32, i32) {
    %c0_i32 = arith.constant 0 : i32
    %c0_i32_0 = arith.constant 0 : i32
    %c0_i32_1 = arith.constant 0 : i32
    return %c0_i32, %c0_i32_0 : i32, i32
  }
  func.func @transform_3(%arg0: i32) -> (i32, i32) {
    %c0_i32 = arith.constant 0 : i32
    %c0_i32_0 = arith.constant 0 : i32
    %c0_i32_1 = arith.constant 0 : i32
    return %c0_i32, %c0_i32_0 : i32, i32
  }
  func.func @transform_4(%arg0: i32) -> (i32, i32) {
    %c0_i32 = arith.constant 0 : i32
    %c0_i32_0 = arith.constant 0 : i32
    %c0_i32_1 = arith.constant 0 : i32
    return %c0_i32, %c0_i32_0 : i32, i32
  }
  func.func @transform_5(%arg0: i32) -> (i32, i32) {
    %c0_i32 = arith.constant 0 : i32
    %c0_i32_0 = arith.constant 0 : i32
    return %arg0, %c0_i32 : i32, i32
  }
  func.func @transform_6(%arg0: i32) -> (i32, i32) {
    %c0_i32 = arith.constant 0 : i32
    %c0_i32_0 = arith.constant 0 : i32
    return %arg0, %c0_i32 : i32, i32
  }
}

</mosaic_0001>

<bundles_post_ra>
// kernel: tpu_custom_call.1
= control target key start
LH: loop header
LB: loop body
LE: loop exit
PB: predicated region body
PF: predicated region fallthrough
CT: control target
= control target key end

     0   :  { %s413_s0 = inlined_call_operand.hbm [shape: f32[8,32], index: 0, kind: input, shape index: {}]   ;;  %s414_s1 = inlined_call_operand.hbm [shape: bf16[32,264], index: 1, kind: input, shape index: {}]   ;;  %s415_s2 = inlined_call_operand.vmem [shape: f32[1,264], index: 2, kind: input, shape index: {}]   ;;  %s416_s3 = inlined_call_operand.vmem [shape: f32[1,256], index: 3, kind: input, shape index: {}]   ;;  %s417_s4 = inlined_call_operand.<no memory space> [shape: f32[1,1], index: 4, kind: input, shape index: {}]   ;;  %s418_s5 = inlined_call_operand.hbm [shape: f32[8,8], index: 5, kind: output, shape index: {0}]   ;;  %s419_s6 = inlined_call_operand.vmem [shape: f32[8,1], index: 6, kind: output, shape index: {1}]  }
   0x1   :  { %v12_v0 = vstv %s417_s4 }
   0x2   :  { %13 = vst [vmem:[#allocation2] sm:$0x1] %v12_v0 }
   0x3   :  { %14 = vsyncpa [#allocation4], 0 }
   0x4   :  { %15 = vsyncpa [#allocation7], 0 }
   0x5   :  { %16 = vsyncpa [#allocation5], 0  ;;  %s349_s23 = smov [#allocation3]   ;;  %s350_s25 = smov [#allocation6]  }
   0x6   :  { %s23_s24 = sshll.u32 %s349_s23, 4  ;;  %s32_s26 = sshll.u32 %s350_s25, 4  ;;  %s24_s24 = int_to_ptr.vmem [resolvable:$true] %s23_s24  ;;  %s33_s26 = int_to_ptr.vmem [resolvable:$true] %s32_s26 }
   0x7   :  { %s291_s27 = scalar_lea.vmem %s24_s24, 128  ;;  %p296_p1 = scmp.lt.s32.totalorder %s24_s24, %s24_s24 }
   0x8   :  { %p292_p0 = scmp.ne.s32.totalorder %s24_s24, %s291_s27  ;;  %p297_p2 = scmp.lt.s32.totalorder %s291_s27, %s291_s27 }
   0xa   :  { %p298_p3 = por %p297_p2, %p296_p1 }
   0xc   :  { %p299_p4 = pnand %p298_p3, %p292_p0 }
   0xe   :  { %302 = shalt.err (!%p299_p4)
}
   0xf   :  { %26 = dma.hbm_to_vmem [thread:$0]  %s413_s0, 128, %s24_s24, [#allocation4]  }
  0x10   :  { %s311_s4 = scalar_lea.vmem %s33_s26, 768  ;;  %p316_p6 = scmp.lt.s32.totalorder %s33_s26, %s33_s26 }
  0x11   :  { %p312_p5 = scmp.ne.s32.totalorder %s33_s26, %s311_s4  ;;  %p317_p7 = scmp.lt.s32.totalorder %s311_s4, %s311_s4 }
  0x13   :  { %p318_p8 = por %p317_p7, %p316_p6 }
  0x15   :  { %p319_p9 = pnand %p318_p8, %p312_p5 }
  0x17   :  { %322 = shalt.err (!%p319_p9)
}
  0x18   :  { %s351_s30 = smov 192   ;;  %s352_s7 = smov 12  }
  0x19   :  { %38 = dma.hbm_to_vmem [thread:$0]  %s414_s1, 768, %s33_s26, [#allocation7], %s351_s30, %s351_s30, %s352_s7  }
  0x1a   :  { %343 = dma.done.wait [#allocation4], 128  }
  0x1b   :  { %344 = vsyncadd [#allocation4], 4294967168 }
  0x1c   :  { %345 = dma.done.wait [#allocation7], 768  }
  0x1d   :  { %346 = vsyncadd [#allocation7], 4294966528  ;;  %v353_v1 = vmov 0   ;;  %v354_v2 = vmov 0.0   ;;  %vm355_vm0 = vmmov 0   ;;  %v52_v7 = vld [vmem:[#allocation3] sm:$0xff]  ;;  %v64_v11 = vlaneseq }
  0x1e   :  { %147 = vmatprep.mubr.bf16.mxu0 %v353_v1  ;;  %259 = vmatprep.subr.bf16.mxu1 %v354_v2  ;;  %v275_v3 = vld [vmem:[#allocation6 + $0x1c] ss:$12 sps:$4 sm:$0xff]   ;;  %v277_v4 = vld [vmem:[#allocation6 + $0x18] ss:$12 sps:$4 sm:$0xff]   ;;  %v280_v6 = vld [vmem:[#allocation6] ss:$12 sps:$4 sm:$0xff]   ;;  %v53_v10 = vpack.c.bf16 %v52_v7, %v52_v7 }
  0x1f   :  { %263 = vmatprep.mubr.msk.bf16.mxu1 %vm355_vm0, %v354_v2  ;;  %127 = vmatprep.subr.bf16.mxu0 %v275_v3  ;;  %v278_v5 = vld [vmem:[#allocation6 + $0x4] ss:$12 sps:$4 sm:$0xff]   ;;  %v281_v8 = vld [vmem:[#allocation6 + $0x20] ss:$12 sps:$4 sm:$0xff]   ;;  %v282_v9 = vld [vmem:[#allocation6 + $0x8] ss:$12 sps:$4 sm:$0xff]  }
  0x20   :  { %128 = vmatpush1.bf16.msra.mxu0 %v277_v4  ;;  %260 = vmatpush3.bf16.msra.mxu1 %v281_v8  ;;  %vm111_vm1 = vcmask 261120   ;;  %v65_v12 = vshrl.u32 %v64_v11, 7  ;;  %v62_v14 = vld [vmem:[%s415_s2] sm:$0x7]  ;;  %vm196_vm2 = vcmask 64512   ;;  %s356_s2 = smov [#allocation8]  }
  0x21   :  { %129 = vmatprep.subr.bf16.mxu0 %v278_v5  ;;  %261 = vmatprep.subr.bf16.mxu1 %v354_v2  ;;  %v200_v19 = vld [vmem:[%s416_s3] sm:$0x3]  ;;  %s233_s3 = sshll.u32 %s356_s2, 4  ;;  %s234_s3 = int_to_ptr.vmem [resolvable:$true] %s233_s3 }
  0x22   :  { %v66_v13 = vsub.s32 0, %v65_v12  ;;  %v70_v15 = vsub.s32 1, %v65_v12  ;;  %v74_v34 = vsub.s32 2, %v65_v12  ;;  %s323_s12 = scalar_lea.vmem %s234_s3, 128  ;;  %p328_p11 = scmp.lt.s32.totalorder %s234_s3, %s234_s3 }
  0x23   :  { %p324_p10 = scmp.ne.s32.totalorder %s234_s3, %s323_s12  ;;  %p329_p12 = scmp.lt.s32.totalorder %s323_s12, %s323_s12 }
  0x24   :  { %130 = vmatpush1.bf16.msra.mxu0 %v280_v6  ;;  %262 = vmatpush3.bf16.msra.mxu1 %v282_v9  ;;  %v67_v16 = vrot.slane %v62_v14, %v66_v13  ;;  %v71_v17 = vrot.slane %v62_v14, %v70_v15  ;;  %v205_v25 = vrot.slane %v200_v19, %v66_v13 }
  0x25   :  { %v209_v26 = vrot.slane %v200_v19, %v70_v15  ;;  %v75_v37 = vrot.slane %v62_v14, %v74_v34  ;;  %p330_p13 = por %p329_p12, %p328_p11 }
  0x27   :  { %253 = vmatmul.mubr.msk.bf16.vlgmr.msra.gmra.mxu0 %vm111_vm1, %v53_v10  ;;  %264 = vmatmul.mubr.msk.bf16.vlgmr.msra.gmra.mxu1 %vm111_vm1, %v53_v10  ;;  %p331_p0 = pnand %p330_p13, %p324_p10 }
  0xe7   :  { %v149_v18 = vpop.f32.mrf.mxu0  ;;  %v190_v22 = vpop.f32.mrf.mxu1 }
  0xe8   :  { %v150_v20 = vadd.f32 %v149_v18, %v67_v16  ;;  %v191_v38 = vadd.f32 %v190_v22, %v75_v37 }
  0xe9   :  { %v151_v21 = vpop.f32.mrf.mxu0  ;;  %v265_v28 = vpop.f32.mrf.mxu1 }
  0xea   :  { %v198_v23 = vmax.f32 %v150_v20, 0.0  ;;  %v152_v24 = vadd.f32 %v151_v21, %v71_v17  ;;  %197 = vst.msk [vmem:[#allocation8] sm:$0xff] %vm196_vm2, %v191_v38 }
  0xeb   :  { %v153_v27 = vpop.f32.mrf.mxu0  ;;  %v193_v31 = vpop.f32.mrf.mxu1 }
  0xec   :  { %v199_v29 = vmax.f32 %v152_v24, 0.0  ;;  %v212_v32 = vmul.f32 %v205_v25, %v198_v23 }
  0xed   :  { %v154_v30 = vpop.f32.mrf.mxu0  ;;  %v266_v35 = vpop.f32.mrf.mxu1 }
  0xee   :  { %v213_v33 = vmul.f32 %v209_v26, %v199_v29 }
  0xf0   :  { %v214_v36 = vadd.f32 %v213_v33, %v212_v32 }
  0xf2   :  { %215 = vadd.xlane.f32.xlu0 %v214_v36 }
  0xf3   :  { %334 = shalt.err (!%p331_p0)
}
  0xf4   :  { %236 = dma.vmem_to_hbm [thread:$0]  %s234_s3, 128, %s418_s5, [#allocation5]   ;;  %v255_v39 = vld [vmem:[#allocation2] ss:$0 sm:$0xff]  ;;  %vm225_vm3 = vcmask 7168  }
 0x17b   :  { %v216_v40 = vpop.xlane.xlu0 %215 }
 0x17c   :  { %v224_v41 = vadd.f32 %v255_v39, %v216_v40 }
 0x17e   :  { %226 = vst.msk [vmem:[%s419_s6] sm:$0xff] %vm225_vm3, %v224_v41 }
 0x17f   :  { %347 = dma.done.wait [#allocation5], 128  }
 0x180   :  { %348 = vsyncadd [#allocation5], 4294967168 }
 0x181   :  { %244 = vsyncpa [#allocation4], 1 }
 0x182   :  { %245 = vsyncpa [#allocation7], 1 }
 0x183   :  { %246 = vsyncpa [#allocation5], 1 }

</bundles_post_ra>
